<compile_context>
chip_gen: v6e
topology: v6e:2x2x1
jax: 0.10.0
libtpu: 0.0.40
codegen_flags: <defaults>
</compile_context>

<pallas_src>
import functools

import jax
import jax.numpy as jnp
from jax import lax
from jax.experimental import pallas as pl
from jax.experimental.pallas import tpu as pltpu

NUM_STEPS = 32    # fixed RK4 steps over t in [0, 1]
TILE_BATCH = 128  # max batch rows per grid step (fills MXU rows, 2-TC split)


def _round_up(n, m):
    return ((n + m - 1) // m) * m


def _ode_block_kernel(x_ref, w1_ref, b1_ref, w2_ref, b2_ref, w3_ref, b3_ref,
                      o_ref, *, num_steps):
    """Integrates dh/dt = MLP(h) from t=0 to t=1 with fixed-step RK4."""
    # Weights loaded once and cast to bf16 (MXU operand dtype on all chips);
    # accumulation stays f32 via preferred_element_type.
    w1 = w1_ref[...].astype(jnp.bfloat16)
    w2 = w2_ref[...].astype(jnp.bfloat16)
    w3 = w3_ref[...].astype(jnp.bfloat16)
    # Biases stay as (1, F) rows; the add below sublane-broadcasts them per
    # use (VALU has slack in this MXU-latency-bound kernel), so no full
    # (TB, F) broadcast tiles are pinned across the loop.
    b1 = b1_ref[...]
    b2 = b2_ref[...]
    b3 = b3_ref[...]

    def odefunc(h):
        # fc1 -> ReLU -> fc2 -> ReLU -> fc3  (time-independent ODEFunc).
        # bf16 operands, f32 accumulate; all elementwise math in f32.
        z = jnp.dot(h.astype(jnp.bfloat16), w1,
                    preferred_element_type=jnp.float32) + b1
        z = jnp.maximum(z, 0.0)
        z = jnp.dot(z.astype(jnp.bfloat16), w2,
                    preferred_element_type=jnp.float32) + b2
        z = jnp.maximum(z, 0.0)
        return jnp.dot(z.astype(jnp.bfloat16), w3,
                       preferred_element_type=jnp.float32) + b3

    dt = jnp.float32(1.0 / num_steps)
    half_dt = jnp.float32(0.5 / num_steps)
    dt_over_6 = jnp.float32(1.0 / (6.0 * num_steps))

    def rk4_step(_, h):
        # Low-storage RK4: only {h, acc, k} (plus odefunc's z) are live.
        k = odefunc(h)                    # k1
        acc = k
        k = odefunc(h + half_dt * k)      # k2
        acc = acc + 2.0 * k
        k = odefunc(h + half_dt * k)      # k3
        acc = acc + 2.0 * k
        k = odefunc(h + dt * k)           # k4
        return h + dt_over_6 * (acc + k)

    h0 = x_ref[...].astype(jnp.float32)
    # Steps are fully data-dependent through h -> nothing to overlap across
    # iterations; keep the loop rolled (default unroll=1).
    h_final = lax.fori_loop(0, num_steps, rk4_step, h0)
    o_ref[...] = h_final.astype(o_ref.dtype)


def ode_block_forward(x, params, *, num_steps=NUM_STEPS,
                      tile_batch=TILE_BATCH):
    """Pallas equivalent of ODEBlock.forward(x)  (eval_times=None -> t=1).

    x: (batch, data_dim) float32
    params: dict with w1 (D,H), b1 (1,H), w2 (H,H), b2 (1,H), w3 (H,D), b3 (1,D)
    """
    batch, data_dim = x.shape
    hidden_dim = params["w1"].shape[1]

    # Feature dims: every block covers the full feature extent, so the
    # (8,128) rule is satisfied without 128-lane padding and the MXU does no
    # zero-padding work.  Batch: pad to a sublane-aligned tile; use 128-row
    # tiles only for batches that fill them so large real batches produce
    # >= 2 grid steps (2-TC sharding on v7x).
    tb = tile_batch if batch >= tile_batch else max(8, _round_up(batch, 8))
    b_pad = _round_up(batch, tb)
    xp = x if b_pad == batch else jnp.pad(x, ((0, b_pad - batch), (0, 0)))

    kernel = functools.partial(_ode_block_kernel, num_steps=num_steps)
    rep = lambda i: (0, 0)  # weights/biases: same block for every batch tile

    out = pl.pallas_call(
        kernel,
        out_shape=jax.ShapeDtypeStruct((b_pad, data_dim), x.dtype),
        grid=(b_pad // tb,),
        in_specs=[
            pl.BlockSpec((tb, data_dim), lambda i: (i, 0)),       # x
            pl.BlockSpec((data_dim, hidden_dim), rep),            # w1
            pl.BlockSpec((1, hidden_dim), rep),                   # b1
            pl.BlockSpec((hidden_dim, hidden_dim), rep),          # w2
            pl.BlockSpec((1, hidden_dim), rep),                   # b2
            pl.BlockSpec((hidden_dim, data_dim), rep),            # w3
            pl.BlockSpec((1, data_dim), rep),                     # b3
        ],
        out_specs=pl.BlockSpec((tb, data_dim), lambda i: (i, 0)),
        compiler_params=pltpu.CompilerParams(
            dimension_semantics=("parallel",),  # 2-TC sharding on v7x
        ),
    )(xp, params["w1"], params["b1"], params["w2"], params["b2"],
      params["w3"], params["b3"])

    return out[:batch, :]


def init_params(key, data_dim, hidden_dim):
    """Deterministic ODEFunc parameters (fc1, fc2, fc3), PyTorch-style init."""
    ks = jax.random.split(key, 6)

    def uniform(k, shape, fan_in):
        bound = 1.0 / (fan_in ** 0.5)
        return jax.random.uniform(k, shape, jnp.float32, -bound, bound)

    return {
        # stored as (in, out) == transpose of torch nn.Linear weight
        "w1": uniform(ks[0], (data_dim, hidden_dim), data_dim),
        "b1": uniform(ks[1], (1, hidden_dim), data_dim),
        "w2": uniform(ks[2], (hidden_dim, hidden_dim), hidden_dim),
        "b2": uniform(ks[3], (1, hidden_dim), hidden_dim),
        "w3": uniform(ks[4], (hidden_dim, data_dim), hidden_dim),
        "b3": uniform(ks[5], (1, data_dim), hidden_dim),
    }


def _reference_forward(x, params, num_steps=NUM_STEPS, matmul_bf16=True):
    """Pure-JAX reference of the same fixed-step RK4 integration.

    matmul_bf16=True matches the kernel's dot lowering (bf16 operands, f32
    accumulate) so the comparison checks the kernel, not the rounding.
    """
    def mm(a, w):
        if matmul_bf16:
            return jnp.dot(a.astype(jnp.bfloat16), w.astype(jnp.bfloat16),
                           preferred_element_type=jnp.float32)
        return jnp.dot(a, w, preferred_element_type=jnp.float32)

    def f(h):
        z = jnp.maximum(mm(h, params["w1"]) + params["b1"], 0.0)
        z = jnp.maximum(mm(z, params["w2"]) + params["b2"], 0.0)
        return mm(z, params["w3"]) + params["b3"]

    dt = 1.0 / num_steps
    h = x
    for _ in range(num_steps):
        k1 = f(h)
        k2 = f(h + 0.5 * dt * k1)
        k3 = f(h + 0.5 * dt * k2)
        k4 = f(h + dt * k3)
        h = h + (dt / 6.0) * (k1 + 2.0 * k2 + 2.0 * k3 + k4)
    return h


if __name__ == "__main__":
    key = jax.random.PRNGKey(0)
    k_x, k_p = jax.random.split(key)

    batch, data_dim, hidden_dim = 8, 32, 64
    x = jax.random.normal(k_x, (batch, data_dim), jnp.float32)
    params = init_params(k_p, data_dim, hidden_dim)

    out = jax.block_until_ready(ode_block_forward(x, params))
    assert out.shape == (batch, data_dim)
    assert bool(jnp.all(jnp.isfinite(out)))

    # Matched-precision reference (bf16 MXU operands, f32 accumulate):
    ref_bf16 = _reference_forward(x, params, matmul_bf16=True)
    assert jnp.allclose(out, ref_bf16, atol=1e-3, rtol=1e-3), \
        "mismatch vs matched-precision JAX reference"

    # Loose sanity bound against the full-f32 integration:
    ref_f32 = _reference_forward(x, params, matmul_bf16=False)
    assert jnp.allclose(out, ref_f32, atol=5e-2, rtol=5e-2), \
        "mismatch vs f32 JAX reference"

    print("KERNEL_OK")
</pallas_src>

<mosaic_0001>
module attributes {stable_mosaic.version = 11 : i64} {
  func.func @_ode_block_kernel(%arg0: i32, %arg1: memref<8x32xf32, #tpu.memory_space<vmem>>, %arg2: memref<32x64xf32, #tpu.memory_space<vmem>>, %arg3: memref<1x64xf32, #tpu.memory_space<vmem>>, %arg4: memref<64x64xf32, #tpu.memory_space<vmem>>, %arg5: memref<1x64xf32, #tpu.memory_space<vmem>>, %arg6: memref<64x32xf32, #tpu.memory_space<vmem>>, %arg7: memref<1x32xf32, #tpu.memory_space<vmem>>, %arg8: memref<8x32xf32, #tpu.memory_space<vmem>>) attributes {dimension_semantics = [#tpu.dimension_semantics<parallel>], iteration_bounds = array<i64: 1>, scalar_prefetch = 0 : i64, scratch_operands = 0 : i64, tpu.core_type = #tpu.core_type<tc>, window_params = [{transform_indices = @transform_0, window_bounds = array<i64: 8, 32>}, {pipeline_mode = #tpu.pipeline_mode<synchronous>, transform_indices = @transform_1, window_bounds = array<i64: 32, 64>}, {pipeline_mode = #tpu.pipeline_mode<synchronous>, transform_indices = @transform_2, window_bounds = array<i64: 1, 64>}, {pipeline_mode = #tpu.pipeline_mode<synchronous>, transform_indices = @transform_3, window_bounds = array<i64: 64, 64>}, {pipeline_mode = #tpu.pipeline_mode<synchronous>, transform_indices = @transform_4, window_bounds = array<i64: 1, 64>}, {pipeline_mode = #tpu.pipeline_mode<synchronous>, transform_indices = @transform_5, window_bounds = array<i64: 64, 32>}, {pipeline_mode = #tpu.pipeline_mode<synchronous>, transform_indices = @transform_6, window_bounds = array<i64: 1, 32>}, {transform_indices = @transform_7, window_bounds = array<i64: 8, 32>}]} {
    %c0 = arith.constant 0 : index
    %c0_0 = arith.constant 0 : index
    %0 = vector.load %arg2[%c0, %c0_0] : memref<32x64xf32, #tpu.memory_space<vmem>>, vector<32x64xf32>
    %1 = arith.truncf %0 : vector<32x64xf32> to vector<32x64xbf16>
    %c0_1 = arith.constant 0 : index
    %c0_2 = arith.constant 0 : index
    %2 = vector.load %arg4[%c0_1, %c0_2] : memref<64x64xf32, #tpu.memory_space<vmem>>, vector<64x64xf32>
    %3 = arith.truncf %2 : vector<64x64xf32> to vector<64x64xbf16>
    %c0_3 = arith.constant 0 : index
    %c0_4 = arith.constant 0 : index
    %4 = vector.load %arg6[%c0_3, %c0_4] : memref<64x32xf32, #tpu.memory_space<vmem>>, vector<64x32xf32>
    %5 = arith.truncf %4 : vector<64x32xf32> to vector<64x32xbf16>
    %c0_5 = arith.constant 0 : index
    %c0_6 = arith.constant 0 : index
    %6 = vector.load %arg3[%c0_5, %c0_6] : memref<1x64xf32, #tpu.memory_space<vmem>>, vector<1x64xf32>
    %c0_7 = arith.constant 0 : index
    %c0_8 = arith.constant 0 : index
    %7 = vector.load %arg5[%c0_7, %c0_8] : memref<1x64xf32, #tpu.memory_space<vmem>>, vector<1x64xf32>
    %c0_9 = arith.constant 0 : index
    %c0_10 = arith.constant 0 : index
    %8 = vector.load %arg7[%c0_9, %c0_10] : memref<1x32xf32, #tpu.memory_space<vmem>>, vector<1x32xf32>
    %c0_11 = arith.constant 0 : index
    %c0_12 = arith.constant 0 : index
    %9 = vector.load %arg1[%c0_11, %c0_12] : memref<8x32xf32, #tpu.memory_space<vmem>>, vector<8x32xf32>
    %cst = arith.constant 1.562500e-02 : f32
    %cst_13 = arith.constant 3.125000e-02 : f32
    %cst_14 = arith.constant 0.00520833349 : f32
    %c0_i32 = arith.constant 0 : i32
    %c32_i32 = arith.constant 32 : i32
    %10 = arith.addi %c0_i32, %c32_i32 : i32
    %c1_i32 = arith.constant 1 : i32
    %11 = scf.for %arg9 = %c0_i32 to %10 step %c1_i32 iter_args(%arg10 = %9) -> (vector<8x32xf32>)  : i32 {
      %13 = arith.truncf %arg10 : vector<8x32xf32> to vector<8x32xbf16>
      %cst_17 = arith.constant dense<0.000000e+00> : vector<8x64xf32>
      %14 = tpu.matmul %13, %1, %cst_17 {dimension_numbers = #tpu.dot_dimension_numbers<[1], [0], [0], [1], [0, 0, 1, 1], [], []>} : vector<8x32xbf16>, vector<32x64xbf16>, vector<8x64xf32> -> vector<8x64xf32>
      %15 = vector.broadcast %6 : vector<1x64xf32> to vector<8x64xf32>
      %16 = arith.addf %14, %15 : vector<8x64xf32>
      %cst_18 = arith.constant 0.000000e+00 : f32
      %17 = vector.broadcast %cst_18 : f32 to vector<8x64xf32>
      %18 = arith.maximumf %16, %17 : vector<8x64xf32>
      %19 = arith.truncf %18 : vector<8x64xf32> to vector<8x64xbf16>
      %cst_19 = arith.constant dense<0.000000e+00> : vector<8x64xf32>
      %20 = tpu.matmul %19, %3, %cst_19 {dimension_numbers = #tpu.dot_dimension_numbers<[1], [0], [0], [1], [0, 0, 1, 1], [], []>} : vector<8x64xbf16>, vector<64x64xbf16>, vector<8x64xf32> -> vector<8x64xf32>
      %21 = vector.broadcast %7 : vector<1x64xf32> to vector<8x64xf32>
      %22 = arith.addf %20, %21 : vector<8x64xf32>
      %cst_20 = arith.constant 0.000000e+00 : f32
      %23 = vector.broadcast %cst_20 : f32 to vector<8x64xf32>
      %24 = arith.maximumf %22, %23 : vector<8x64xf32>
      %25 = arith.truncf %24 : vector<8x64xf32> to vector<8x64xbf16>
      %cst_21 = arith.constant dense<0.000000e+00> : vector<8x32xf32>
      %26 = tpu.matmul %25, %5, %cst_21 {dimension_numbers = #tpu.dot_dimension_numbers<[1], [0], [0], [1], [0, 0, 1, 1], [], []>} : vector<8x64xbf16>, vector<64x32xbf16>, vector<8x32xf32> -> vector<8x32xf32>
      %27 = vector.broadcast %8 : vector<1x32xf32> to vector<8x32xf32>
      %28 = arith.addf %26, %27 : vector<8x32xf32>
      %29 = vector.broadcast %cst : f32 to vector<8x32xf32>
      %30 = arith.mulf %29, %28 : vector<8x32xf32>
      %31 = arith.addf %arg10, %30 : vector<8x32xf32>
      %32 = arith.truncf %31 : vector<8x32xf32> to vector<8x32xbf16>
      %cst_22 = arith.constant dense<0.000000e+00> : vector<8x64xf32>
      %33 = tpu.matmul %32, %1, %cst_22 {dimension_numbers = #tpu.dot_dimension_numbers<[1], [0], [0], [1], [0, 0, 1, 1], [], []>} : vector<8x32xbf16>, vector<32x64xbf16>, vector<8x64xf32> -> vector<8x64xf32>
      %34 = vector.broadcast %6 : vector<1x64xf32> to vector<8x64xf32>
      %35 = arith.addf %33, %34 : vector<8x64xf32>
      %cst_23 = arith.constant 0.000000e+00 : f32
      %36 = vector.broadcast %cst_23 : f32 to vector<8x64xf32>
      %37 = arith.maximumf %35, %36 : vector<8x64xf32>
      %38 = arith.truncf %37 : vector<8x64xf32> to vector<8x64xbf16>
      %cst_24 = arith.constant dense<0.000000e+00> : vector<8x64xf32>
      %39 = tpu.matmul %38, %3, %cst_24 {dimension_numbers = #tpu.dot_dimension_numbers<[1], [0], [0], [1], [0, 0, 1, 1], [], []>} : vector<8x64xbf16>, vector<64x64xbf16>, vector<8x64xf32> -> vector<8x64xf32>
      %40 = vector.broadcast %7 : vector<1x64xf32> to vector<8x64xf32>
      %41 = arith.addf %39, %40 : vector<8x64xf32>
      %cst_25 = arith.constant 0.000000e+00 : f32
      %42 = vector.broadcast %cst_25 : f32 to vector<8x64xf32>
      %43 = arith.maximumf %41, %42 : vector<8x64xf32>
      %44 = arith.truncf %43 : vector<8x64xf32> to vector<8x64xbf16>
      %cst_26 = arith.constant dense<0.000000e+00> : vector<8x32xf32>
      %45 = tpu.matmul %44, %5, %cst_26 {dimension_numbers = #tpu.dot_dimension_numbers<[1], [0], [0], [1], [0, 0, 1, 1], [], []>} : vector<8x64xbf16>, vector<64x32xbf16>, vector<8x32xf32> -> vector<8x32xf32>
      %46 = vector.broadcast %8 : vector<1x32xf32> to vector<8x32xf32>
      %47 = arith.addf %45, %46 : vector<8x32xf32>
      %cst_27 = arith.constant 2.000000e+00 : f32
      %48 = vector.broadcast %cst_27 : f32 to vector<8x32xf32>
      %49 = arith.mulf %48, %47 : vector<8x32xf32>
      %50 = arith.addf %28, %49 : vector<8x32xf32>
      %51 = vector.broadcast %cst : f32 to vector<8x32xf32>
      %52 = arith.mulf %51, %47 : vector<8x32xf32>
      %53 = arith.addf %arg10, %52 : vector<8x32xf32>
      %54 = arith.truncf %53 : vector<8x32xf32> to vector<8x32xbf16>
      %cst_28 = arith.constant dense<0.000000e+00> : vector<8x64xf32>
      %55 = tpu.matmul %54, %1, %cst_28 {dimension_numbers = #tpu.dot_dimension_numbers<[1], [0], [0], [1], [0, 0, 1, 1], [], []>} : vector<8x32xbf16>, vector<32x64xbf16>, vector<8x64xf32> -> vector<8x64xf32>
      %56 = vector.broadcast %6 : vector<1x64xf32> to vector<8x64xf32>
      %57 = arith.addf %55, %56 : vector<8x64xf32>
      %cst_29 = arith.constant 0.000000e+00 : f32
      %58 = vector.broadcast %cst_29 : f32 to vector<8x64xf32>
      %59 = arith.maximumf %57, %58 : vector<8x64xf32>
      %60 = arith.truncf %59 : vector<8x64xf32> to vector<8x64xbf16>
      %cst_30 = arith.constant dense<0.000000e+00> : vector<8x64xf32>
      %61 = tpu.matmul %60, %3, %cst_30 {dimension_numbers = #tpu.dot_dimension_numbers<[1], [0], [0], [1], [0, 0, 1, 1], [], []>} : vector<8x64xbf16>, vector<64x64xbf16>, vector<8x64xf32> -> vector<8x64xf32>
      %62 = vector.broadcast %7 : vector<1x64xf32> to vector<8x64xf32>
      %63 = arith.addf %61, %62 : vector<8x64xf32>
      %cst_31 = arith.constant 0.000000e+00 : f32
      %64 = vector.broadcast %cst_31 : f32 to vector<8x64xf32>
      %65 = arith.maximumf %63, %64 : vector<8x64xf32>
      %66 = arith.truncf %65 : vector<8x64xf32> to vector<8x64xbf16>
      %cst_32 = arith.constant dense<0.000000e+00> : vector<8x32xf32>
      %67 = tpu.matmul %66, %5, %cst_32 {dimension_numbers = #tpu.dot_dimension_numbers<[1], [0], [0], [1], [0, 0, 1, 1], [], []>} : vector<8x64xbf16>, vector<64x32xbf16>, vector<8x32xf32> -> vector<8x32xf32>
      %68 = vector.broadcast %8 : vector<1x32xf32> to vector<8x32xf32>
      %69 = arith.addf %67, %68 : vector<8x32xf32>
      %cst_33 = arith.constant 2.000000e+00 : f32
      %70 = vector.broadcast %cst_33 : f32 to vector<8x32xf32>
      %71 = arith.mulf %70, %69 : vector<8x32xf32>
      %72 = arith.addf %50, %71 : vector<8x32xf32>
      %73 = vector.broadcast %cst_13 : f32 to vector<8x32xf32>
      %74 = arith.mulf %73, %69 : vector<8x32xf32>
      %75 = arith.addf %arg10, %74 : vector<8x32xf32>
      %76 = arith.truncf %75 : vector<8x32xf32> to vector<8x32xbf16>
      %cst_34 = arith.constant dense<0.000000e+00> : vector<8x64xf32>
      %77 = tpu.matmul %76, %1, %cst_34 {dimension_numbers = #tpu.dot_dimension_numbers<[1], [0], [0], [1], [0, 0, 1, 1], [], []>} : vector<8x32xbf16>, vector<32x64xbf16>, vector<8x64xf32> -> vector<8x64xf32>
      %78 = vector.broadcast %6 : vector<1x64xf32> to vector<8x64xf32>
      %79 = arith.addf %77, %78 : vector<8x64xf32>
      %cst_35 = arith.constant 0.000000e+00 : f32
      %80 = vector.broadcast %cst_35 : f32 to vector<8x64xf32>
      %81 = arith.maximumf %79, %80 : vector<8x64xf32>
      %82 = arith.truncf %81 : vector<8x64xf32> to vector<8x64xbf16>
      %cst_36 = arith.constant dense<0.000000e+00> : vector<8x64xf32>
      %83 = tpu.matmul %82, %3, %cst_36 {dimension_numbers = #tpu.dot_dimension_numbers<[1], [0], [0], [1], [0, 0, 1, 1], [], []>} : vector<8x64xbf16>, vector<64x64xbf16>, vector<8x64xf32> -> vector<8x64xf32>
      %84 = vector.broadcast %7 : vector<1x64xf32> to vector<8x64xf32>
      %85 = arith.addf %83, %84 : vector<8x64xf32>
      %cst_37 = arith.constant 0.000000e+00 : f32
      %86 = vector.broadcast %cst_37 : f32 to vector<8x64xf32>
      %87 = arith.maximumf %85, %86 : vector<8x64xf32>
      %88 = arith.truncf %87 : vector<8x64xf32> to vector<8x64xbf16>
      %cst_38 = arith.constant dense<0.000000e+00> : vector<8x32xf32>
      %89 = tpu.matmul %88, %5, %cst_38 {dimension_numbers = #tpu.dot_dimension_numbers<[1], [0], [0], [1], [0, 0, 1, 1], [], []>} : vector<8x64xbf16>, vector<64x32xbf16>, vector<8x32xf32> -> vector<8x32xf32>
      %90 = vector.broadcast %8 : vector<1x32xf32> to vector<8x32xf32>
      %91 = arith.addf %89, %90 : vector<8x32xf32>
      %92 = arith.addf %72, %91 : vector<8x32xf32>
      %93 = vector.broadcast %cst_14 : f32 to vector<8x32xf32>
      %94 = arith.mulf %93, %92 : vector<8x32xf32>
      %95 = arith.addf %arg10, %94 : vector<8x32xf32>
      scf.yield %95 : vector<8x32xf32>
    }
    %c0_15 = arith.constant 0 : index
    %c0_16 = arith.constant 0 : index
    %12 = vector.load %arg8[%c0_15, %c0_16] : memref<8x32xf32, #tpu.memory_space<vmem>>, vector<8x32xf32>
    tpu.vector_store %arg8[%c0_15, %c0_16], %11 {strides = array<i32>} : memref<8x32xf32, #tpu.memory_space<vmem>>, vector<8x32xf32>,
    return
  }
  func.func @transform_0(%arg0: i32) -> (i32, i32) {
    %c0_i32 = arith.constant 0 : i32
    %c0_i32_0 = arith.constant 0 : i32
    return %arg0, %c0_i32 : i32, i32
  }
  func.func @transform_1(%arg0: i32) -> (i32, i32) {
    %c0_i32 = arith.constant 0 : i32
    %c0_i32_0 = arith.constant 0 : i32
    %c0_i32_1 = arith.constant 0 : i32
    return %c0_i32, %c0_i32_0 : i32, i32
  }
  func.func @transform_2(%arg0: i32) -> (i32, i32) {
    %c0_i32 = arith.constant 0 : i32
    %c0_i32_0 = arith.constant 0 : i32
    %c0_i32_1 = arith.constant 0 : i32
    return %c0_i32, %c0_i32_0 : i32, i32
  }
  func.func @transform_3(%arg0: i32) -> (i32, i32) {
    %c0_i32 = arith.constant 0 : i32
    %c0_i32_0 = arith.constant 0 : i32
    %c0_i32_1 = arith.constant 0 : i32
    return %c0_i32, %c0_i32_0 : i32, i32
  }
  func.func @transform_4(%arg0: i32) -> (i32, i32) {
    %c0_i32 = arith.constant 0 : i32
    %c0_i32_0 = arith.constant 0 : i32
    %c0_i32_1 = arith.constant 0 : i32
    return %c0_i32, %c0_i32_0 : i32, i32
  }
  func.func @transform_5(%arg0: i32) -> (i32, i32) {
    %c0_i32 = arith.constant 0 : i32
    %c0_i32_0 = arith.constant 0 : i32
    %c0_i32_1 = arith.constant 0 : i32
    return %c0_i32, %c0_i32_0 : i32, i32
  }
  func.func @transform_6(%arg0: i32) -> (i32, i32) {
    %c0_i32 = arith.constant 0 : i32
    %c0_i32_0 = arith.constant 0 : i32
    %c0_i32_1 = arith.constant 0 : i32
    return %c0_i32, %c0_i32_0 : i32, i32
  }
  func.func @transform_7(%arg0: i32) -> (i32, i32) {
    %c0_i32 = arith.constant 0 : i32
    %c0_i32_0 = arith.constant 0 : i32
    return %arg0, %c0_i32 : i32, i32
  }
}

</mosaic_0001>

<bundles_post_ra>
// kernel: tpu_custom_call.1
= control target key start
LH: loop header
LB: loop body
LE: loop exit
PB: predicated region body
PF: predicated region fallthrough
CT: control target
= control target key end

     0   :  { %12 = vsyncpa [#allocation3], 0  ;;  %s1249_s0 = inlined_call_operand.hbm [shape: f32[8,32], index: 0, kind: input, shape index: {}]   ;;  %s1250_s1 = inlined_call_operand.vmem [shape: f32[32,64], index: 1, kind: input, shape index: {}]   ;;  %s1251_s2 = inlined_call_operand.vmem [shape: f32[1,64], index: 2, kind: input, shape index: {}]   ;;  %s1252_s3 = inlined_call_operand.vmem [shape: f32[64,64], index: 3, kind: input, shape index: {}]   ;;  %s1253_s4 = inlined_call_operand.vmem [shape: f32[1,64], index: 4, kind: input, shape index: {}]   ;;  %s1254_s5 = inlined_call_operand.vmem [shape: f32[64,32], index: 5, kind: input, shape index: {}]   ;;  %s1255_s6 = inlined_call_operand.vmem [shape: f32[1,32], index: 6, kind: input, shape index: {}]   ;;  %s1256_s7 = inlined_call_operand.hbm [shape: f32[8,32], index: 7, kind: output, shape index: {}]  }
   0x1   :  { %13 = vsyncpa [#allocation4], 0  ;;  %s950_s24 = smov [#allocation2]  }
   0x2   :  { %s20_s25 = sshll.u32 %s950_s24, 4  ;;  %s21_s25 = int_to_ptr.vmem [resolvable:$true] %s20_s25 }
   0x3   :  { %s898_s26 = scalar_lea.vmem %s21_s25, 128  ;;  %p903_p1 = scmp.lt.s32.totalorder %s21_s25, %s21_s25 }
   0x4   :  { %p899_p0 = scmp.ne.s32.totalorder %s21_s25, %s898_s26  ;;  %p904_p2 = scmp.lt.s32.totalorder %s898_s26, %s898_s26 }
   0x6   :  { %p905_p3 = por %p904_p2, %p903_p1 }
   0x8   :  { %p906_p4 = pnand %p905_p3, %p899_p0 }
   0xa   :  { %909 = shalt.err (!%p906_p4)
}
   0xb   :  { %23 = dma.hbm_to_vmem [thread:$0]  %s1249_s0, 128, %s21_s25, [#allocation3]  }
   0xc   :  { %938 = dma.done.wait [#allocation3], 128  }
   0xd   :  { %939 = vsyncadd [#allocation3], 4294967168  ;;  %v40_v0 = vld [vmem:[%s1250_s1] sm:$0xff]  ;;  %v41_v1 = vld [vmem:[%s1250_s1 + $0x8] sm:$0xff] }
   0xe   :  { %v42_v2 = vld [vmem:[%s1250_s1 + $0x10] sm:$0xff]  ;;  %v43_v3 = vld [vmem:[%s1250_s1 + $0x18] sm:$0xff]  ;;  %v1009_v4 = vpack.c.bf16 %v41_v1, %v40_v0  ;;  %v46_v5 = vld [vmem:[%s1252_s3] sm:$0xff] }
   0xf   :  { %v47_v6 = vld [vmem:[%s1252_s3 + $0x8] sm:$0xff]  ;;  %v1017_v7 = vpack.c.bf16 %v43_v3, %v42_v2  ;;  %v48_v8 = vld [vmem:[%s1252_s3 + $0x10] sm:$0xff]  ;;  %v49_v9 = vld [vmem:[%s1252_s3 + $0x18] sm:$0xff] }
  0x10   :  { %v50_v10 = vld [vmem:[%s1252_s3 + $0x20] sm:$0xff]  ;;  %v1028_v11 = vpack.c.bf16 %v47_v6, %v46_v5  ;;  %v51_v12 = vld [vmem:[%s1252_s3 + $0x28] sm:$0xff]  ;;  %v52_v13 = vld [vmem:[%s1252_s3 + $0x30] sm:$0xff]  ;;  %v1039_v15 = vpack.c.bf16 %v49_v9, %v48_v8 }
  0x11   :  { %v53_v14 = vld [vmem:[%s1252_s3 + $0x38] sm:$0xff]  ;;  %v1041_v16 = vpack.c.bf16 %v51_v12, %v50_v10  ;;  %v58_v18 = vld [vmem:[%s1254_s5] sm:$0xff]  ;;  %v59_v19 = vld [vmem:[%s1254_s5 + $0x8] sm:$0xff] }
  0x12   :  { %v1043_v17 = vpack.c.bf16 %v53_v14, %v52_v13  ;;  %v60_v20 = vld [vmem:[%s1254_s5 + $0x10] sm:$0xff]  ;;  %v61_v21 = vld [vmem:[%s1254_s5 + $0x18] sm:$0xff]  ;;  %v62_v22 = vld [vmem:[%s1254_s5 + $0x20] sm:$0xff]  ;;  %v1063_v24 = vpack.c.bf16 %v59_v19, %v58_v18 }
  0x13   :  { %v63_v23 = vld [vmem:[%s1254_s5 + $0x28] sm:$0xff]  ;;  %v64_v25 = vld [vmem:[%s1254_s5 + $0x30] sm:$0xff]  ;;  %v65_v26 = vld [vmem:[%s1254_s5 + $0x38] sm:$0xff]  ;;  %v1071_v27 = vpack.c.bf16 %v61_v21, %v60_v20  ;;  %s1094_s5 = smov 0  }
  0x14   :  { %v1073_v28 = vpack.c.bf16 %v63_v23, %v62_v22  ;;  %v1078_v29 = vld [vmem:[%s1251_s2] ss:$0 sm:$0xff]  ;;  %v1080_v30 = vpack.c.bf16 %v65_v26, %v64_v25 }
  0x15   :  { %v1085_v31 = vld [vmem:[%s1253_s4] ss:$0 sm:$0xff] }
  0x16   :  { %v1090_v32 = vld [vmem:[%s1255_s6] ss:$0 sm:$0xff] }
  0x17   :  { %v73_v33 = vld [vmem:[#allocation2] sm:$0xff]  }
  0x18 LB: > { %v951_v34 = vmov 0.0   ;;  %vm952_vm0 = vmmov 0   ;;  %v81_v35 = vpack.c.bf16 %v944_v33, %v944_v33  ;;  %vm88_vm1 = vcmask 261120   ;;  %s79_s5 = sadd.s32 1, %s948_s5   ;;  %s948_s5 = sphi %s1094_s5, %s79_s5   ;;  %v944_v33 = vphi %v73_v33, %v1257_v33  }
  0x19   : > { %742 = vmatprep.subr.bf16.mxu0 %v951_v34  ;;  %746 = vmatprep.mubr.msk.bf16.mxu0 %vm952_vm0, %v951_v34  ;;  %vm140_vm2 = vcmask 523264   ;;  %p76_p5 = scmp.ge.s32.totalorder %s79_s5, 32  }
  0x1a   : > { %743 = vmatpush3.bf16.msra.mxu0 %v1017_v7  ;;  %750 = vmatprep.subr.bf16.mxu1 %v951_v34  ;;  %s953_s2 = smov (%p76_p5), [#allocation5]  }
  0x1b   : > { %744 = vmatprep.subr.bf16.mxu0 %v951_v34  ;;  %751 = vmatpush3.bf16.msra.mxu1 %v1043_v17  ;;  %s658_s4 = sshll.u32 (%p76_p5), %s953_s2, 4  ;;  %s659_s4 = int_to_ptr.vmem [resolvable:$true] %s658_s4 }
  0x1c   : > { %752 = vmatprep.subr.bf16.mxu1 %v951_v34  ;;  %758 = vmatprep.mubr.msk.bf16.mxu1 %vm952_vm0, %v951_v34  ;;  %s910_s6 = scalar_lea.vmem (%p76_p5), %s659_s4, 128  ;;  %p915_p7 = scmp.lt.s32.totalorder (%p76_p5), %s659_s4, %s659_s4 }
  0x1d   :  { %p911_p6 = scmp.ne.s32.totalorder (%p76_p5), %s659_s4, %s910_s6  ;;  %p916_p8 = scmp.lt.s32.totalorder (%p76_p5), %s910_s6, %s910_s6 }
  0x1e   : > { %745 = vmatpush3.bf16.msra.mxu0 %v1009_v4 }
  0x1f   : > { %753 = vmatpush3.bf16.msra.mxu1 %v1041_v16  ;;  %762 = vmatprep.subr.bf16.mxu0 %v951_v34  ;;  %p917_p9 = por (%p76_p5), %p916_p8, %p915_p7 }
  0x20   : > { %754 = vmatprep.subr.bf16.mxu1 %v951_v34 }
  0x21   : > { %747 = vmatmul.mubr.msk.bf16.vlgmr.msra.gmra.mxu0 %vm88_vm1, %v81_v35  ;;  %p918_p10 = pnand (%p76_p5), %p917_p9, %p911_p6 }
  0x22   : > { %763 = vmatpush3.bf16.msra.mxu0 %v1080_v30  ;;  %770 = vmatprep.mubr.msk.bf16.mxu0 %vm952_vm0, %v951_v34 }
  0x23   : > { %755 = vmatpush3.bf16.msra.mxu1 %v1039_v15  ;;  %764 = vmatprep.subr.bf16.mxu0 %v951_v34 }
  0x24   : > { %756 = vmatprep.subr.bf16.mxu1 %v951_v34 }
  0x26   : > { %765 = vmatpush3.bf16.msra.mxu0 %v1073_v28 }
  0x27   : > { %757 = vmatpush3.bf16.msra.mxu1 %v1028_v11  ;;  %766 = vmatprep.subr.bf16.mxu0 %v951_v34 }
  0x28   : > { %774 = vmatprep.subr.bf16.mxu1 %v951_v34 }
  0x2a   : > { %767 = vmatpush3.bf16.msra.mxu0 %v1071_v27 }
  0x2b   : > { %768 = vmatprep.subr.bf16.mxu0 %v951_v34 }
  0x2e   : > { %769 = vmatpush3.bf16.msra.mxu0 %v1063_v24 }
  0x2f   : > { %782 = vmatprep.subr.bf16.mxu0 %v951_v34 }
  0xe1   : > { %v126_v36 = vpop.f32.mrf.mxu0 }
  0xe2   : > { %v127_v37 = vadd.f32 %v1078_v29, %v126_v36 }
  0xe3   : > { %v748_v38 = vpop.f32.mrf.mxu0 }
  0xe4   : > { %v132_v39 = vmax.f32 %v127_v37, 0.0 }
  0xe5   : > { %v129_v40 = vpop.f32.mrf.mxu0 }
  0xe6   : > { %v133_v41 = vpack.c.bf16 %v132_v39, %v132_v39 }
  0xe7   : > { %v749_v42 = vpop.f32.mrf.mxu0 }
  0xe8   : > { %759 = vmatmul.mubr.msk.bf16.vlgmr.msra.gmra.mxu1 %vm140_vm2, %v133_v41 }
  0xe9   : > { %775 = vmatpush3.bf16.msra.mxu1 %v1017_v7  ;;  %778 = vmatprep.mubr.msk.bf16.mxu1 %vm952_vm0, %v951_v34 }
  0xea   : > { %776 = vmatprep.subr.bf16.mxu1 %v951_v34 }
  0xed   : > { %777 = vmatpush3.bf16.msra.mxu1 %v1009_v4 }
  0xee   : > { %794 = vmatprep.subr.bf16.mxu1 %v951_v34 }
 0x1a8   : > { %v178_v43 = vpop.f32.mrf.mxu1 }
 0x1a9   : > { %v179_v44 = vadd.f32 %v1085_v31, %v178_v43 }
 0x1aa   : > { %v760_v45 = vpop.f32.mrf.mxu1 }
 0x1ab   : > { %v184_v46 = vmax.f32 %v179_v44, 0.0 }
 0x1ac   : > { %v181_v47 = vpop.f32.mrf.mxu1 }
 0x1ad   : > { %v185_v48 = vpack.c.bf16 %v184_v46, %v184_v46 }
 0x1ae   : > { %v761_v49 = vpop.f32.mrf.mxu1 }
 0x1af   : > { %771 = vmatmul.mubr.msk.bf16.vlgmr.msra.gmra.mxu0 %vm140_vm2, %v185_v48 }
 0x1b0   : > { %783 = vmatpush3.bf16.msra.mxu0 %v1043_v17  ;;  %790 = vmatprep.mubr.msk.bf16.mxu0 %vm952_vm0, %v951_v34 }
 0x1b1   : > { %784 = vmatprep.subr.bf16.mxu0 %v951_v34 }
 0x1b4   : > { %785 = vmatpush3.bf16.msra.mxu0 %v1041_v16 }
 0x1b5   : > { %786 = vmatprep.subr.bf16.mxu0 %v951_v34 }
 0x1b8   : > { %787 = vmatpush3.bf16.msra.mxu0 %v1039_v15 }
 0x1b9   : > { %788 = vmatprep.subr.bf16.mxu0 %v951_v34 }
 0x1bc   : > { %789 = vmatpush3.bf16.msra.mxu0 %v1028_v11 }
 0x1bd   : > { %806 = vmatprep.subr.bf16.mxu0 %v951_v34 }
 0x26f   : > { %v229_v50 = vpop.f32.mrf.mxu0 }
 0x270   : > { %v1154_v51 = vadd.f32 %v1090_v32, %v229_v50 }
 0x271   : > { %v772_v52 = vpop.f32.mrf.mxu0 }
 0x272   : > { %v235_v53 = vmul.f32 0.015625, %v1154_v51 }
 0x273   : > { %v232_v54 = vpop.f32.mrf.mxu0 }
 0x274   : > { %v236_v55 = vadd.f32 %v944_v33, %v235_v53 }
 0x275   : > { %v773_v56 = vpop.f32.mrf.mxu0 }
 0x276   : > { %v237_v57 = vpack.c.bf16 %v236_v55, %v236_v55 }
 0x278   : > { %779 = vmatmul.mubr.msk.bf16.vlgmr.msra.gmra.mxu1 %vm88_vm1, %v237_v57 }
 0x279   : > { %795 = vmatpush3.bf16.msra.mxu1 %v1080_v30  ;;  %802 = vmatprep.mubr.msk.bf16.mxu1 %vm952_vm0, %v951_v34 }
 0x27a   : > { %796 = vmatprep.subr.bf16.mxu1 %v951_v34 }
 0x27d   : > { %797 = vmatpush3.bf16.msra.mxu1 %v1073_v28 }
 0x27e   : > { %798 = vmatprep.subr.bf16.mxu1 %v951_v34 }
 0x281   : > { %799 = vmatpush3.bf16.msra.mxu1 %v1071_v27 }
 0x282   : > { %800 = vmatprep.subr.bf16.mxu1 %v951_v34 }
 0x285   : > { %801 = vmatpush3.bf16.msra.mxu1 %v1063_v24 }
 0x286   : > { %814 = vmatprep.subr.bf16.mxu1 %v951_v34 }
 0x338   : > { %v275_v58 = vpop.f32.mrf.mxu1 }
 0x339   : > { %v276_v59 = vadd.f32 %v1078_v29, %v275_v58 }
 0x33a   : > { %v780_v60 = vpop.f32.mrf.mxu1 }
 0x33b   : > { %v281_v61 = vmax.f32 %v276_v59, 0.0 }
 0x33c   : > { %v278_v62 = vpop.f32.mrf.mxu1 }
 0x33d   : > { %v282_v63 = vpack.c.bf16 %v281_v61, %v281_v61 }
 0x33e   : > { %v781_v0 = vpop.f32.mrf.mxu1 }
 0x33f   : > { %791 = vmatmul.mubr.msk.bf16.vlgmr.msra.gmra.mxu0 %vm140_vm2, %v282_v63 }
 0x340   : > { %807 = vmatpush3.bf16.msra.mxu0 %v1017_v7  ;;  %810 = vmatprep.mubr.msk.bf16.mxu0 %vm952_vm0, %v951_v34 }
 0x341   : > { %808 = vmatprep.subr.bf16.mxu0 %v951_v34 }
 0x344   : > { %809 = vmatpush3.bf16.msra.mxu0 %v1009_v4 }
 0x345   : > { %826 = vmatprep.subr.bf16.mxu0 %v951_v34 }
 0x3ff   : > { %v320_v1 = vpop.f32.mrf.mxu0 }
 0x400   : > { %v321_v2 = vadd.f32 %v1085_v31, %v320_v1 }
 0x401   : > { %v792_v3 = vpop.f32.mrf.mxu0 }
 0x402   : > { %v326_v5 = vmax.f32 %v321_v2, 0.0 }
 0x403   : > { %v323_v6 = vpop.f32.mrf.mxu0 }
 0x404   : > { %v327_v8 = vpack.c.bf16 %v326_v5, %v326_v5 }
 0x405   : > { %v793_v9 = vpop.f32.mrf.mxu0 }
 0x406   : > { %803 = vmatmul.mubr.msk.bf16.vlgmr.msra.gmra.mxu1 %vm140_vm2, %v327_v8 }
 0x407   : > { %815 = vmatpush3.bf16.msra.mxu1 %v1043_v17  ;;  %822 = vmatprep.mubr.msk.bf16.mxu1 %vm952_vm0, %v951_v34 }
 0x408   : > { %816 = vmatprep.subr.bf16.mxu1 %v951_v34 }
 0x40b   : > { %817 = vmatpush3.bf16.msra.mxu1 %v1041_v16 }
 0x40c   : > { %818 = vmatprep.subr.bf16.mxu1 %v951_v34 }
 0x40f   : > { %819 = vmatpush3.bf16.msra.mxu1 %v1039_v15 }
 0x410   : > { %820 = vmatprep.subr.bf16.mxu1 %v951_v34 }
 0x413   : > { %821 = vmatpush3.bf16.msra.mxu1 %v1028_v11 }
 0x414   : > { %838 = vmatprep.subr.bf16.mxu1 %v951_v34 }
 0x4c6   : > { %v365_v10 = vpop.f32.mrf.mxu1 }
 0x4c7   : > { %v366_v12 = vadd.f32 %v1090_v32, %v365_v10 }
 0x4c8   : > { %v804_v13 = vpop.f32.mrf.mxu1 }
 0x4c9   : > { %v373_v14 = vmul.f32 0.015625, %v366_v12  ;;  %v371_v45 = vmul.f32 2.0, %v366_v12 }
 0x4ca   : > { %v368_v18 = vpop.f32.mrf.mxu1 }
 0x4cb   : > { %v374_v19 = vadd.f32 %v944_v33, %v373_v14  ;;  %v372_v49 = vadd.f32 %v371_v45, %v1154_v51 }
 0x4cc   : > { %v805_v20 = vpop.f32.mrf.mxu1 }
 0x4cd   : > { %v375_v21 = vpack.c.bf16 %v374_v19, %v374_v19 }
 0x4cf   : > { %811 = vmatmul.mubr.msk.bf16.vlgmr.msra.gmra.mxu0 %vm88_vm1, %v375_v21 }
 0x4d0   : > { %827 = vmatpush3.bf16.msra.mxu0 %v1080_v30  ;;  %834 = vmatprep.mubr.msk.bf16.mxu0 %vm952_vm0, %v951_v34 }
 0x4d1   : > { %828 = vmatprep.subr.bf16.mxu0 %v951_v34 }
 0x4d4   : > { %829 = vmatpush3.bf16.msra.mxu0 %v1073_v28 }
 0x4d5   : > { %830 = vmatprep.subr.bf16.mxu0 %v951_v34 }
 0x4d8   : > { %831 = vmatpush3.bf16.msra.mxu0 %v1071_v27 }
 0x4d9   : > { %832 = vmatprep.subr.bf16.mxu0 %v951_v34 }
 0x4dc   : > { %833 = vmatpush3.bf16.msra.mxu0 %v1063_v24 }
 0x4dd   : > { %846 = vmatprep.subr.bf16.mxu0 %v951_v34 }
 0x58f   : > { %v413_v22 = vpop.f32.mrf.mxu0 }
 0x590   : > { %v414_v23 = vadd.f32 %v1078_v29, %v413_v22 }
 0x591   : > { %v812_v25 = vpop.f32.mrf.mxu0 }
 0x592   : > { %v419_v26 = vmax.f32 %v414_v23, 0.0 }
 0x593   : > { %v416_v35 = vpop.f32.mrf.mxu0 }
 0x594   : > { %v420_v36 = vpack.c.bf16 %v419_v26, %v419_v26 }
 0x595   : > { %v813_v37 = vpop.f32.mrf.mxu0 }
 0x596   : > { %823 = vmatmul.mubr.msk.bf16.vlgmr.msra.gmra.mxu1 %vm140_vm2, %v420_v36 }
 0x597   : > { %839 = vmatpush3.bf16.msra.mxu1 %v1017_v7  ;;  %842 = vmatprep.mubr.msk.bf16.mxu1 %vm952_vm0, %v951_v34 }
 0x598   : > { %840 = vmatprep.subr.bf16.mxu1 %v951_v34 }
 0x59b   : > { %841 = vmatpush3.bf16.msra.mxu1 %v1009_v4 }
 0x59c   : > { %858 = vmatprep.subr.bf16.mxu1 %v951_v34 }
 0x656   : > { %v458_v38 = vpop.f32.mrf.mxu1 }
 0x657   : > { %v459_v39 = vadd.f32 %v1085_v31, %v458_v38 }
 0x658   : > { %v824_v40 = vpop.f32.mrf.mxu1 }
 0x659   : > { %v464_v41 = vmax.f32 %v459_v39, 0.0 }
 0x65a   : > { %v461_v42 = vpop.f32.mrf.mxu1 }
 0x65b   : > { %v465_v43 = vpack.c.bf16 %v464_v41, %v464_v41 }
 0x65c   : > { %v825_v44 = vpop.f32.mrf.mxu1 }
 0x65d   : > { %835 = vmatmul.mubr.msk.bf16.vlgmr.msra.gmra.mxu0 %vm140_vm2, %v465_v43 }
 0x65e   : > { %847 = vmatpush3.bf16.msra.mxu0 %v1043_v17  ;;  %854 = vmatprep.mubr.msk.bf16.mxu0 %vm952_vm0, %v951_v34 }
 0x65f   : > { %848 = vmatprep.subr.bf16.mxu0 %v951_v34 }
 0x662   : > { %849 = vmatpush3.bf16.msra.mxu0 %v1041_v16 }
 0x663   : > { %850 = vmatprep.subr.bf16.mxu0 %v951_v34 }
 0x666   : > { %851 = vmatpush3.bf16.msra.mxu0 %v1039_v15 }
 0x667   : > { %852 = vmatprep.subr.bf16.mxu0 %v951_v34 }
 0x66a   : > { %853 = vmatpush3.bf16.msra.mxu0 %v1028_v11 }
 0x71d   : > { %v503_v46 = vpop.f32.mrf.mxu0 }
 0x71e   : > { %v504_v47 = vadd.f32 %v1090_v32, %v503_v46 }
 0x71f   : > { %v836_v48 = vpop.f32.mrf.mxu0 }
 0x720   : > { %v509_v50 = vmul.f32 2.0, %v504_v47  ;;  %v511_v52 = vmul.f32 0.03125, %v504_v47 }
 0x721   : > { %v506_v53 = vpop.f32.mrf.mxu0 }
 0x722   : > { %v512_v54 = vadd.f32 %v944_v33, %v511_v52  ;;  %v510_v55 = vadd.f32 %v509_v50, %v372_v49 }
 0x723   : > { %v837_v56 = vpop.f32.mrf.mxu0 }
 0x724   : > { %v513_v57 = vpack.c.bf16 %v512_v54, %v512_v54 }
 0x726   : > { %843 = vmatmul.mubr.msk.bf16.vlgmr.msra.gmra.mxu1 %vm88_vm1, %v513_v57 }
 0x727   : > { %859 = vmatpush3.bf16.msra.mxu1 %v1080_v30  ;;  %866 = vmatprep.mubr.msk.bf16.mxu1 %vm952_vm0, %v951_v34 }
 0x728   : > { %860 = vmatprep.subr.bf16.mxu1 %v951_v34 }
 0x72b   : > { %861 = vmatpush3.bf16.msra.mxu1 %v1073_v28 }
 0x72c   : > { %862 = vmatprep.subr.bf16.mxu1 %v951_v34 }
 0x72f   : > { %863 = vmatpush3.bf16.msra.mxu1 %v1071_v27 }
 0x730   : > { %864 = vmatprep.subr.bf16.mxu1 %v951_v34 }
 0x733   : > { %865 = vmatpush3.bf16.msra.mxu1 %v1063_v24 }
 0x7e6   : > { %v551_v51 = vpop.f32.mrf.mxu1 }
 0x7e7   : > { %v552_v58 = vadd.f32 %v1078_v29, %v551_v51 }
 0x7e8   : > { %v844_v59 = vpop.f32.mrf.mxu1 }
 0x7e9   : > { %v557_v60 = vmax.f32 %v552_v58, 0.0 }
 0x7ea   : > { %v554_v61 = vpop.f32.mrf.mxu1 }
 0x7eb   : > { %v558_v62 = vpack.c.bf16 %v557_v60, %v557_v60 }
 0x7ec   : > { %v845_v63 = vpop.f32.mrf.mxu1 }
 0x7ed   : > { %855 = vmatmul.mubr.msk.bf16.vlgmr.msra.gmra.mxu0 %vm140_vm2, %v558_v62 }
 0x8ad   : > { %v596_v0 = vpop.f32.mrf.mxu0 }
 0x8ae   : > { %v597_v1 = vadd.f32 %v1085_v31, %v596_v0 }
 0x8af   : > { %v856_v2 = vpop.f32.mrf.mxu0 }
 0x8b0   : > { %v602_v3 = vmax.f32 %v597_v1, 0.0 }
 0x8b1   : > { %v599_v5 = vpop.f32.mrf.mxu0 }
 0x8b2   : > { %v603_v6 = vpack.c.bf16 %v602_v3, %v602_v3 }
 0x8b3   : > { %v857_v34 = vpop.f32.mrf.mxu0 }
 0x8b4   : > { %867 = vmatmul.mubr.msk.bf16.vlgmr.msra.gmra.mxu1 %vm140_vm2, %v603_v6 }
 0x974   : > { %v641_v8 = vpop.f32.mrf.mxu1 }
 0x975   : > { %v642_v9 = vadd.f32 %v1090_v32, %v641_v8 }
 0x976   : > { %v868_v10 = vpop.f32.mrf.mxu1 }
 0x977   : > { %v647_v12 = vadd.f32 %v642_v9, %v510_v55 }
 0x978   : > { %v644_v13 = vpop.f32.mrf.mxu1 }
 0x979   : > { %v648_v14 = vmul.f32 0.0052083335, %v647_v12  ;;  %78 = sbr.rel (!%p76_p5) target bundleno = 24 (0x18), region = 59 }
 0x97a   : > { %v869_v18 = vpop.f32.mrf.mxu1 }
 0x97b   : > { %v649_v19 = vadd.f32 %v944_v33, %v648_v14  }
 0x97d   : > { %v1257_v33 = vmov %v649_v19  ;;  %651 = vst.msk [vmem:[#allocation5] sm:$0xff] (%p76_p5), %vm88_vm1, %v649_v19 }
 0x97e   :  { %921 = shalt.err (!%p918_p10)
}
 0x97f   :  { %661 = dma.vmem_to_hbm [thread:$0]  %s659_s4, 128, %s1256_s7, [#allocation4]  }
 0x980   :  { %940 = dma.done.wait [#allocation4], 128  }
 0x981   :  { %941 = vsyncadd [#allocation4], 4294967168 }
 0x982   :  { %665 = vsyncpa [#allocation3], 1 }
 0x983   :  { %666 = vsyncpa [#allocation4], 1 }

</bundles_post_ra>
